<compile_context>
chip_gen: v7x
topology: tpu7x:2x2x1
jax: 0.10.0
libtpu: 0.0.40
codegen_flags: <defaults>
</compile_context>

<pallas_src>
import jax
import jax.numpy as jnp
from jax.experimental import pallas as pl
from jax.experimental.pallas import tpu as pltpu


def _residual_linear_kernel(x_ref, w_ref, b_ref, o_ref, acc_ref):
    """One (i, j, k) grid step of  out = x + x @ W + b.

    x_ref  : (tm, tk)  K-slice of x rows (also the residual when k == j)
    w_ref  : (tk, tn)  (K, N) tile of W
    b_ref  : (1,  tn)  bias tile
    o_ref  : (tm, tn)  output tile
    acc_ref: (tm, tn)  f32 accumulator (resident across the K axis)
    """
    j = pl.program_id(1)
    k = pl.program_id(2)

    @pl.when(k == 0)
    def _init():
        # Initialize the accumulator with the bias (epilogue add saved).
        acc_ref[...] = jnp.broadcast_to(
            b_ref[...].astype(jnp.float32), acc_ref.shape
        )

    @pl.when(k == j)
    def _residual():
        # tn == tk, so this K slice of x IS the (i, j) residual block.
        acc_ref[...] += x_ref[...].astype(jnp.float32)

    acc_ref[...] += jnp.dot(
        x_ref[...], w_ref[...], preferred_element_type=jnp.float32
    )

    @pl.when(k == pl.num_programs(2) - 1)
    def _finalize():
        o_ref[...] = acc_ref[...].astype(o_ref.dtype)


def _round_up(x, m):
    return (x + m - 1) // m * m


def _pick_lane_tile(h_pad):
    # h_pad is a multiple of 128; take the widest tile that divides it.
    for cand in (1024, 512, 256, 128):
        if h_pad % cand == 0:
            return cand
    return h_pad


def _pick_row_tile(m, min_tile):
    # Minimize row padding waste; break ties toward the larger tile.
    candidates = [c for c in (256, 128, 64, 32, 16, 8) if c >= min_tile]
    best = min_tile
    best_waste = _round_up(m, best) - m
    for cand in candidates:
        waste = _round_up(m, cand) - m
        if waste < best_waste or (waste == best_waste and cand > best):
            best, best_waste = cand, waste
    return best


def residual_linear(x, w, b, *, mxu_dtype=None):
    """out = x + (x @ w + b).   x: [..., H], w: [H, H], b: [H].

    mxu_dtype: optional dtype for the MXU operands (pass jnp.bfloat16 for full
      MXU rate on v5e/v6e/v7x).  Defaults to x.dtype (bit-faithful semantics).
    """
    orig_shape = x.shape
    H = orig_shape[-1]
    M = 1
    for d in orig_shape[:-1]:
        M *= d

    op_dtype = jnp.dtype(mxu_dtype) if mxu_dtype is not None else jnp.dtype(x.dtype)
    out_dtype = x.dtype
    op_itemsize = op_dtype.itemsize
    out_itemsize = jnp.dtype(out_dtype).itemsize

    # bf16 packs 16 rows per sublane-tile; f32 packs 8.
    min_row_tile = 16 if op_itemsize < 4 else 8

    H_pad = _round_up(H, 128)
    tn = tk = _pick_lane_tile(H_pad)        # tn == tk -> residual is the k == j slice
    tm = _pick_row_tile(M, min_row_tile)
    M_pad = _round_up(M, tm)

    # Megacore (v7x): keep >= 2 tiles on the parallel axes when it costs nothing.
    if M_pad // tm == 1 and H_pad // tn == 1 and tm >= 2 * min_row_tile:
        tm //= 2                            # M_pad stays divisible (powers of two)

    # Operand dtype cast (no-op in the default path).
    x2 = x.reshape(M, H)
    if op_dtype != x2.dtype:
        x2 = x2.astype(op_dtype)
    w2 = w.astype(op_dtype) if op_dtype != jnp.dtype(w.dtype) else w
    b2 = b

    # Pad only when actually required (skip the extra HBM round trips otherwise).
    padded = (M_pad != M) or (H_pad != H)
    if padded:
        x2 = jnp.pad(x2, ((0, M_pad - M), (0, H_pad - H)))
    if H_pad != H:
        w2 = jnp.pad(w2, ((0, H_pad - H), (0, H_pad - H)))
        b2 = jnp.pad(b2, (0, H_pad - H))
    b2 = b2.reshape(1, H_pad)

    grid = (M_pad // tm, H_pad // tn, H_pad // tk)

    # Advisory cost estimate (accounts for x / W tile re-reads across the grid).
    cost = pl.CostEstimate(
        flops=2 * M_pad * H_pad * H_pad,
        transcendentals=0,
        bytes_accessed=(
            op_itemsize * (M_pad * H_pad * (H_pad // tn)       # x re-reads
                           + H_pad * H_pad * (M_pad // tm))    # W re-reads
            + out_itemsize * M_pad * H_pad                     # output writeback
        ),
    )

    # Explicit VMEM budget: double-buffered x/W/bias/out tiles + f32 accumulator.
    vmem_need = (
        2 * tm * tk * op_itemsize
        + 2 * tk * tn * op_itemsize
        + 2 * tn * op_itemsize
        + 2 * tm * tn * out_itemsize
        + tm * tn * 4
    )
    vmem_limit = min(64 * 1024 * 1024, max(32 * 1024 * 1024, 2 * vmem_need))

    out = pl.pallas_call(
        _residual_linear_kernel,
        out_shape=jax.ShapeDtypeStruct((M_pad, H_pad), out_dtype),
        grid=grid,
        in_specs=[
            pl.BlockSpec((tm, tk), lambda i, j, k: (i, k)),   # x (matmul + residual)
            pl.BlockSpec((tk, tn), lambda i, j, k: (k, j)),   # W
            pl.BlockSpec((1, tn), lambda i, j, k: (0, j)),    # bias
        ],
        out_specs=pl.BlockSpec((tm, tn), lambda i, j, k: (i, j)),
        scratch_shapes=[pltpu.VMEM((tm, tn), jnp.float32)],
        compiler_params=pltpu.CompilerParams(
            dimension_semantics=("parallel", "parallel", "arbitrary"),
            vmem_limit_bytes=int(vmem_limit),
        ),
        cost_estimate=cost,
    )(x2, w2, b2)

    if padded:
        out = out[:M, :H]
    return out.reshape(orig_shape)


if __name__ == "__main__":
    # Small shapes implied by the forward: batch=2, seq=8, hidden=32.
    B, S, H = 2, 8, 32
    key = jax.random.PRNGKey(0)
    kx, kw, kb = jax.random.split(key, 3)

    x = jax.random.normal(kx, (B, S, H), dtype=jnp.float32)
    # Deterministic synthetic parameters (mimics nn.Linear(H, H) shapes).
    w = jax.random.normal(kw, (H, H), dtype=jnp.float32) * (1.0 / jnp.sqrt(H))
    b = jax.random.normal(kb, (H,), dtype=jnp.float32) * 0.01

    # Exact-dtype path (matches the f32 PyTorch module).
    out = residual_linear(x, w, b)
    jax.block_until_ready(out)
    ref = x + (jnp.einsum("bsh,hk->bsk", x, w) + b)
    assert out.shape == ref.shape, "shape mismatch vs reference"
    assert jnp.allclose(out, ref, atol=1e-5, rtol=1e-5), "mismatch vs reference"

    # bf16-operand path (full MXU rate on v5e/v6e/v7x) — looser tolerance.
    xb, wb, bb = (t.astype(jnp.bfloat16) for t in (x, w, b))
    out_bf16 = residual_linear(xb, wb, bb)
    jax.block_until_ready(out_bf16)
    ref_bf16 = (xb.astype(jnp.float32)
                + jnp.einsum("bsh,hk->bsk", xb.astype(jnp.float32),
                             wb.astype(jnp.float32))
                + bb.astype(jnp.float32))
    assert jnp.allclose(out_bf16.astype(jnp.float32), ref_bf16,
                        atol=5e-2, rtol=5e-2), "bf16 path mismatch vs reference"

    print("KERNEL_OK")
</pallas_src>

<mosaic_0001>
module attributes {stable_mosaic.version = 11 : i64} {
  func.func @_residual_linear_kernel(%arg0: i32, %arg1: i32, %arg2: i32, %arg3: memref<8x128xf32, #tpu.memory_space<vmem>>, %arg4: memref<128x128xf32, #tpu.memory_space<vmem>>, %arg5: memref<1x128xf32, #tpu.memory_space<vmem>>, %arg6: memref<8x128xf32, #tpu.memory_space<vmem>>, %arg7: memref<8x128xf32, #tpu.memory_space<vmem>>) attributes {dimension_semantics = [#tpu.dimension_semantics<parallel>, #tpu.dimension_semantics<parallel>, #tpu.dimension_semantics<arbitrary>], iteration_bounds = array<i64: 2, 1, 1>, scalar_prefetch = 0 : i64, scratch_operands = 1 : i64, tpu.core_type = #tpu.core_type<tc>, window_params = [{transform_indices = @transform_0, window_bounds = array<i64: 8, 128>}, {transform_indices = @transform_1, window_bounds = array<i64: 128, 128>}, {transform_indices = @transform_2, window_bounds = array<i64: 1, 128>}, {transform_indices = @transform_3, window_bounds = array<i64: 8, 128>}]} {
    %c0_i32 = arith.constant 0 : i32
    %0 = arith.cmpi eq, %arg2, %c0_i32 : i32
    %1 = arith.extui %0 : i1 to i32
    %c0_i32_0 = arith.constant 0 : i32
    %2 = arith.cmpi ne, %1, %c0_i32_0 : i32
    scf.if %2 {
      %c0_11 = arith.constant 0 : index
      %c0_12 = arith.constant 0 : index
      %15 = vector.load %arg5[%c0_11, %c0_12] : memref<1x128xf32, #tpu.memory_space<vmem>>, vector<1x128xf32>
      %16 = vector.shape_cast %15 : vector<1x128xf32> to vector<1x128xf32>
      %17 = vector.broadcast %16 : vector<1x128xf32> to vector<8x128xf32>
      %c0_13 = arith.constant 0 : index
      %c0_14 = arith.constant 0 : index
      %18 = vector.load %arg7[%c0_13, %c0_14] : memref<8x128xf32, #tpu.memory_space<vmem>>, vector<8x128xf32>
      tpu.vector_store %arg7[%c0_13, %c0_14], %17 {strides = array<i32>} : memref<8x128xf32, #tpu.memory_space<vmem>>, vector<8x128xf32>,
    } else {
    }
    %3 = arith.cmpi eq, %arg2, %arg1 : i32
    %4 = arith.extui %3 : i1 to i32
    %c0_i32_1 = arith.constant 0 : i32
    %5 = arith.cmpi ne, %4, %c0_i32_1 : i32
    scf.if %5 {
      %c0_11 = arith.constant 0 : index
      %c0_12 = arith.constant 0 : index
      %15 = vector.load %arg7[%c0_11, %c0_12] : memref<8x128xf32, #tpu.memory_space<vmem>>, vector<8x128xf32>
      %c0_13 = arith.constant 0 : index
      %c0_14 = arith.constant 0 : index
      %16 = vector.load %arg3[%c0_13, %c0_14] : memref<8x128xf32, #tpu.memory_space<vmem>>, vector<8x128xf32>
      %17 = arith.addf %15, %16 : vector<8x128xf32>
      %c0_15 = arith.constant 0 : index
      %c0_16 = arith.constant 0 : index
      %18 = vector.load %arg7[%c0_15, %c0_16] : memref<8x128xf32, #tpu.memory_space<vmem>>, vector<8x128xf32>
      tpu.vector_store %arg7[%c0_15, %c0_16], %17 {strides = array<i32>} : memref<8x128xf32, #tpu.memory_space<vmem>>, vector<8x128xf32>,
    } else {
    }
    %c0 = arith.constant 0 : index
    %c0_2 = arith.constant 0 : index
    %6 = vector.load %arg7[%c0, %c0_2] : memref<8x128xf32, #tpu.memory_space<vmem>>, vector<8x128xf32>
    %c0_3 = arith.constant 0 : index
    %c0_4 = arith.constant 0 : index
    %7 = vector.load %arg3[%c0_3, %c0_4] : memref<8x128xf32, #tpu.memory_space<vmem>>, vector<8x128xf32>
    %c0_5 = arith.constant 0 : index
    %c0_6 = arith.constant 0 : index
    %8 = vector.load %arg4[%c0_5, %c0_6] : memref<128x128xf32, #tpu.memory_space<vmem>>, vector<128x128xf32>
    %cst = arith.constant dense<0.000000e+00> : vector<8x128xf32>
    %9 = tpu.matmul %7, %8, %cst {dimension_numbers = #tpu.dot_dimension_numbers<[1], [0], [0], [1], [0, 0, 1, 1], [], []>} : vector<8x128xf32>, vector<128x128xf32>, vector<8x128xf32> -> vector<8x128xf32>
    %10 = arith.addf %6, %9 : vector<8x128xf32>
    %c0_7 = arith.constant 0 : index
    %c0_8 = arith.constant 0 : index
    %11 = vector.load %arg7[%c0_7, %c0_8] : memref<8x128xf32, #tpu.memory_space<vmem>>, vector<8x128xf32>
    tpu.vector_store %arg7[%c0_7, %c0_8], %10 {strides = array<i32>} : memref<8x128xf32, #tpu.memory_space<vmem>>, vector<8x128xf32>,
    %c0_i32_9 = arith.constant 0 : i32
    %12 = arith.cmpi eq, %arg2, %c0_i32_9 : i32
    %13 = arith.extui %12 : i1 to i32
    %c0_i32_10 = arith.constant 0 : i32
    %14 = arith.cmpi ne, %13, %c0_i32_10 : i32
    scf.if %14 {
      %c0_11 = arith.constant 0 : index
      %c0_12 = arith.constant 0 : index
      %15 = vector.load %arg7[%c0_11, %c0_12] : memref<8x128xf32, #tpu.memory_space<vmem>>, vector<8x128xf32>
      %c0_13 = arith.constant 0 : index
      %c0_14 = arith.constant 0 : index
      %16 = vector.load %arg6[%c0_13, %c0_14] : memref<8x128xf32, #tpu.memory_space<vmem>>, vector<8x128xf32>
      tpu.vector_store %arg6[%c0_13, %c0_14], %15 {strides = array<i32>} : memref<8x128xf32, #tpu.memory_space<vmem>>, vector<8x128xf32>,
    } else {
    }
    return
  }
  func.func @transform_0(%arg0: i32, %arg1: i32, %arg2: i32) -> (i32, i32) {
    %c0_i32 = arith.constant 0 : i32
    return %arg0, %arg2 : i32, i32
  }
  func.func @transform_1(%arg0: i32, %arg1: i32, %arg2: i32) -> (i32, i32) {
    %c0_i32 = arith.constant 0 : i32
    return %arg2, %arg1 : i32, i32
  }
  func.func @transform_2(%arg0: i32, %arg1: i32, %arg2: i32) -> (i32, i32) {
    %c0_i32 = arith.constant 0 : i32
    %c0_i32_0 = arith.constant 0 : i32
    return %c0_i32, %arg1 : i32, i32
  }
  func.func @transform_3(%arg0: i32, %arg1: i32, %arg2: i32) -> (i32, i32) {
    %c0_i32 = arith.constant 0 : i32
    return %arg0, %arg1 : i32, i32
  }
}

</mosaic_0001>

<bundles_post_ra>
// kernel: tpu_custom_call.1
= control target key start
LH: loop header
LB: loop body
LE: loop exit
PB: predicated region body
PF: predicated region fallthrough
CT: control target
= control target key end

     0   :  { %8 = vsyncpa [#allocation4], 0  ;;  %s1059_s0 = inlined_call_operand.hbm [shape: f32[16,128], index: 0, kind: input, shape index: {}]   ;;  %s1060_s1 = inlined_call_operand.hbm [shape: f32[128,128], index: 1, kind: input, shape index: {}]   ;;  %s1061_s2 = inlined_call_operand.vmem [shape: f32[1,128], index: 2, kind: input, shape index: {}]   ;;  %s1062_s3 = inlined_call_operand.hbm [shape: f32[16,128], index: 3, kind: output, shape index: {}]  }
   0x1   :  { %10 = vsyncpa [#allocation4 + $0x1], 0 }
   0x2   :  { %11 = vsyncpa [#allocation7], 0 }
   0x3   :  { %12 = vsyncpa [#allocation5], 0 }
   0x4   :  { %14 = vsyncpa [#allocation5 + $0x1], 0  ;;  %s835_s12 = smov 0   ;;  %s837_s13 = smov 0  }
   0x5   :  { %s839_s14 = smov 0   ;;  %s841_s15 = smov 0  }
   0x6   :  { %s843_s16 = smov 0   ;;  %s845_s17 = smov 0  }
   0x7 LB: > { %s490_s18 = sadd.s32 4294967295, %s805_s17   ;;  %s491_s19 = sadd.s32 4294967294, %s805_s17   ;;  %s805_s17 = sphi %s845_s17, %s20_s17   ;;  %s801_s16 = sphi %s843_s16, %s1086_s16   ;;  %s797_s15 = sphi %s841_s15, %s1085_s15   ;;  %s793_s14 = sphi %s839_s14, %s1084_s14   ;;  %s789_s13 = sphi %s837_s13, %s1083_s13   ;;  %s785_s12 = sphi %s835_s12, %s1082_s12  }
   0x8   : > { %p61_p0 = scmp.ne.s32.totalorder %s789_s13, %s785_s12  ;;  %p869_p1 = scmp.eq.s32.totalorder %s490_s18, 0 }
   0x9   : > { %p873_p2 = scmp.eq.s32.totalorder %s490_s18, 1  ;;  %p147_p3 = scmp.eq.s32.totalorder %s491_s19, 1 }
   0xa   : > { %s1067_s20 = scalar_select %p869_p1, 1, 0 }
   0xb   : > { %s1068_s21 = scalar_select %p873_p2, 1, 0 }
   0xc   : > { %p879_p4 = por %p869_p1, %p61_p0  ;;  %p492_p5 = scmp.ge.s32.totalorder %s805_s17, 1 }
   0xd   : > { %p884_p6 = por %p147_p3, %p61_p0  ;;  %p154_p7 = scmp.lt.s32.totalorder %s805_s17, 3 }
   0xe   : > { %s1069_s22 = scalar_select %p879_p4, 1, 0 }
   0xf   : > { %s1070_s23 = scalar_select %p884_p6, 1, 0 }
  0x10   : > { %p889_p8 = pnand %p492_p5, %p154_p7  ;;  %s807_s25 = smov [#allocation6]  }
  0x11   : > { %s170_s26 = sshll.u32 %s807_s25, 4  ;;  %s39_s28 = sadd.s32 1, %s801_s16  ;;  %s171_s26 = int_to_ptr.vmem [resolvable:$true] %s170_s26 }
  0x12   : > { %s1071_s24 = scalar_select %p889_p8, 1, 0 }
  0x13   : > { %p591_p9 = pneg %p889_p8  ;;  %s661_s4 = scalar_lea.hbm %s1060_s1, 2048 }
  0x14   : > { %p662_p12 = scmp.ne.s32.totalorder %s1060_s1, %s661_s4  ;;  %p668_p5 = scmp.lt.u32.totalorder %s661_s4, %s1060_s1 }
  0x15   : > { %p898_p11 = pnand %p591_p9, %p869_p1 }
  0x17   : > { %p663_p13 = pneg %p898_p11 }
  0x19   : > { %p664_p0 = pnand %p663_p13, %p662_p12 }
  0x1b   : > { %p665_p3 = pneg %p664_p0 }
  0x1d   : > { %p670_p7 = pnand %p668_p5, %p665_p3 }
  0x1f   : > { %673 = shalt.err (!%p670_p7)
}
  0x20   : > { %s674_s9 = scalar_lea.vmem %s171_s26, 2048  ;;  %p682_p1 = scmp.lt.s32.totalorder %s171_s26, %s171_s26 }
  0x21   : > { %p675_p9 = scmp.ne.s32.totalorder %s171_s26, %s674_s9  ;;  %p683_p4 = scmp.lt.s32.totalorder %s674_s9, %s674_s9 }
  0x23   : > { %p677_p10 = pnand %p675_p9, %p663_p13  ;;  %p684_p8 = por %p683_p4, %p682_p1 }
  0x25   : > { %p678_p6 = pneg %p677_p10 }
  0x27   : > { %p685_p2 = pnand %p684_p8, %p678_p6 }
  0x29   : > { %688 = shalt.err (!%p685_p2)
}
  0x2a   : > { %s808_s10 = smov 128   ;;  %s809_s11 = smov 8  }
  0x2b   : > { %594 = dma.hbm_to_vmem [thread:$0]  (!%p898_p11), %s1060_s1, 2048, %s171_s26, [#allocation7], %s808_s10, %s808_s10, %s809_s11  }
  0x2c   : > { %p41_p1 = scmp.ge.s32.totalorder %s39_s28, 2  ;;  %s48_s25 = sadd.s32 1, %s793_s14 }
  0x2d   : > { %p55_p2 = scmp.ne.s32.totalorder %s793_s14, %s789_s13  ;;  %p56_p4 = scmp.eq.s32.totalorder %s805_s17, 0 }
  0x2e   : > { %s1088_s28 = smov (%p41_p1, %s39_s28), 0  ;;  %p1074_p8 = scmp.ne.s32.totalorder %s1068_s21, 0 }
  0x2f   : > { %p925_p6 = por %p56_p4, %p55_p2  ;;  %s43_s27 = ssub.s32 %s801_s16, %s1088_s28 }
  0x30   : > { %p931_p10 = por %p1074_p8, %p55_p2  ;;  %p604_p12 = scmp.lt.s32.totalorder %s805_s17, 2 }
  0x31   : > { %p46_p11 = scmp.eq.s32.totalorder %s43_s27, 0  ;;  %s190_s26 = sand.u32 1, %s793_s14  }
  0x32   : > { %s496_s4 = sshll.u32 %s190_s26, 3  ;;  %s497_s6 = sshll.u32 %s801_s16, 7 }
  0x33   : > { %s940_s5 = scalar_select %p46_p11, %s793_s14, %s48_s25  }
  0x34   : > { %s946_s9 = scalar_lea.hbm %s1059_s0, %s497_s6  ;;  %s194_s21 = scalar_lea.vmem [#allocation3], %s496_s4 }
  0x35   : > { %s202_s10 = sshll.u32 %s194_s21, 4  ;;  %p952_p13 = pnand %p604_p12, %p925_p6  ;;  %s948_s10 = int_to_ptr.vmem [resolvable:$true] %s202_s10 }
  0x36   : > { %s191_s18 = scalar_lea.sflag [#allocation4], %s190_s26  ;;  %s689_s19 = scalar_lea.hbm %s946_s9, 128 }
  0x37   : > { %p690_p0 = scmp.ne.s32.totalorder %s946_s9, %s689_s19  ;;  %p691_p3 = pneg %p952_p13 }
  0x38   : > { %s694_s4 = scalar_lea.hbm %s1059_s0, 256  ;;  %p695_p9 = scmp.lt.u32.totalorder %s946_s9, %s1059_s0 }
  0x39   : > { %p692_p5 = pnand %p691_p3, %p690_p0  ;;  %p696_p1 = scmp.lt.u32.totalorder %s694_s4, %s689_s19 }
  0x3a   : > { %p698_p4 = scmp.lt.u32.totalorder %s689_s19, %s946_s9 }
  0x3b   : > { %p693_p7 = pneg %p692_p5  ;;  %p697_p2 = por %p696_p1, %p695_p9 }
  0x3d   : > { %p699_p6 = por %p698_p4, %p697_p2 }
  0x3f   : > { %p700_p8 = pnand %p699_p6, %p693_p7 }
  0x41   : > { %703 = shalt.err (!%p700_p8)
}
  0x42   : > { %s704_s26 = scalar_lea.vmem %s948_s10, 128  ;;  %s810_s7 = smov [#allocation3]  }
  0x43   : > { %p705_p12 = scmp.ne.s32.totalorder %s948_s10, %s704_s26  ;;  %s709_s8 = sshll.u32 %s810_s7, 4  ;;  %s710_s8 = int_to_ptr.vmem [resolvable:$false] %s709_s8 }
  0x44   : > { %s711_s21 = scalar_lea.vmem %s710_s8, 256  ;;  %p712_p5 = scmp.lt.s32.totalorder %s948_s10, %s710_s8 }
  0x45   : > { %p707_p11 = pnand %p705_p12, %p691_p3  ;;  %p713_p9 = scmp.lt.s32.totalorder %s711_s21, %s704_s26 }
  0x47   : > { %p708_p0 = pneg %p707_p11  ;;  %p714_p1 = por %p713_p9, %p712_p5 }
  0x49   : > { %p715_p2 = pnand %p714_p1, %p708_p0 }
  0x4b   : > { %718 = shalt.err (!%p715_p2)
}
  0x4c   : > { %598 = dma.hbm_to_vmem [thread:$0]  (!%p952_p13), %s946_s9, 128, %s948_s10, %s191_s18  }
  0x4d   : > { %p1077_p7 = scmp.ne.s32.totalorder %s1071_s24, 0 }
  0x4e   : > { %s984_s19 = sand.u32 (!%p1077_p7), 1, %s789_s13   ;;  %p1078_p3 = scmp.ne.s32.totalorder (!%p1077_p7), %s1069_s22, 0 }
  0x4f   : > { %211 = sbr.rel (%p1077_p7) target bundleno = 353 (0x161), region = 32  ;;  %s499_s25 = sshll.u32 (!%p1077_p7), %s984_s19, 3 }
  0x50   : > { %s214_s27 = scalar_lea.sflag (!%p1077_p7), [#allocation4], %s984_s19  ;;  %s990_s4 = scalar_lea.vmem (!%p1077_p7), [#allocation3], %s499_s25 }
  0x56   : > { %772 = dma.done.wait (%p1078_p3), %s214_s27, 128  }
  0x57   : > { %774 = vsyncadd (%p1078_p3), %s214_s27, 4294967168  ;;  %p1079_p13 = scmp.ne.s32.totalorder %s1067_s20, 0 }
  0x59   : > { %776 = dma.done.wait (%p1079_p13), [#allocation7], 2048  }
  0x5a   : > { %778 = vsyncadd (%p1079_p13), [#allocation7], 4294965248  ;;  %v811_v0 = vmov 0.0|0.0   ;;  %vm812_vm0 = vmmov 0   ;;  %v813_v1 = vmov 0.0   ;;  %v273_v2 = vld [vmem:[#allocation6] sm:$0xff] }
  0x5b   : > { %559 = vmatprep.subr.bf16.mxu0 %v811_v0  ;;  %556 = vmatprep.mubr.msk.f32.mxu0 %vm812_vm0, %v813_v1  ;;  %v274_v3 = vld [vmem:[#allocation6 + $0x8] sm:$0xff]  ;;  %v275_v4 = vld [vmem:[#allocation6 + $0x10] sm:$0xff]  ;;  %v276_v6 = vld [vmem:[#allocation6 + $0x18] sm:$0xff]  ;;  %s504_s24 = sshll.u32 %s797_s15, 7  ;;  %s246_s9 = scalar_lea.vmem [#allocation8], %s499_s25 }
  0x5c   : > { %v560_v5 = vpack.c.bf16 %v274_v3, %v273_v2  ;;  %v563_v7 = vpack.c.bf16 %v276_v6, %v275_v4  ;;  %v277_v8 = vld [vmem:[#allocation6 + $0x20] sm:$0xff]  ;;  %v278_v9 = vld [vmem:[#allocation6 + $0x28] sm:$0xff]  ;;  %v279_v11 = vld [vmem:[#allocation6 + $0x30] sm:$0xff]  ;;  %s381_s10 = sshll.u32 %s246_s9, 4  ;;  %s1010_s29 = scalar_lea.hbm %s1062_s3, %s504_s24  ;;  %s1012_s10 = int_to_ptr.vmem [resolvable:$true] %s381_s10 }
  0x5d   : > { %v566_v10 = vpack.c.bf16 %v278_v9, %v277_v8  ;;  %v280_v12 = vld [vmem:[#allocation6 + $0x38] sm:$0xff]  ;;  %v281_v14 = vld [vmem:[#allocation6 + $0x40] sm:$0xff]  ;;  %v282_v15 = vld [vmem:[#allocation6 + $0x48] sm:$0xff]  ;;  %s367_s6 = scalar_lea.sflag [#allocation5], %s984_s19  ;;  %s719_s26 = scalar_lea.vmem %s1012_s10, 128 }
  0x5e   : > { %561 = vmatpush3.bf16.msra.mxu0 %v560_v5  ;;  %v569_v13 = vpack.c.bf16 %v280_v12, %v279_v11  ;;  %v572_v16 = vpack.c.bf16 %v282_v15, %v281_v14  ;;  %v283_v17 = vld [vmem:[#allocation6 + $0x50] sm:$0xff]  ;;  %v284_v18 = vld [vmem:[#allocation6 + $0x58] sm:$0xff]  ;;  %v285_v20 = vld [vmem:[#allocation6 + $0x60] sm:$0xff]  ;;  %p720_p4 = scmp.ne.s32.totalorder %s1012_s10, %s719_s26  ;;  %s814_s15 = smov [#allocation8]  }
  0x5f   : > { %562 = vmatprep.subr.bf16.mxu0 %v811_v0  ;;  %v575_v19 = vpack.c.bf16 %v284_v18, %v283_v17  ;;  %v286_v21 = vld [vmem:[#allocation6 + $0x68] sm:$0xff]  ;;  %v287_v23 = vld [vmem:[#allocation6 + $0x70] sm:$0xff]  ;;  %v288_v24 = vld [vmem:[#allocation6 + $0x78] sm:$0xff]  ;;  %s723_s7 = sshll.u32 %s814_s15, 4  ;;  %s724_s7 = int_to_ptr.vmem [resolvable:$false] %s723_s7 }
  0x60   : > { %v578_v22 = vpack.c.bf16 %v286_v21, %v285_v20  ;;  %v581_v25 = vpack.c.bf16 %v288_v24, %v287_v23  ;;  %v272_v26 = vld [vmem:[%s990_s4] sm:$0xff]  ;;  %p721_p6 = pnand %p720_p4, %p931_p10  ;;  %s725_s8 = scalar_lea.vmem %s724_s7, 256 }
  0x61   : > { %v502_v27 = vld [vmem:[%s1061_s2] ss:$0 sm:$0xff]  ;;  %p726_p12 = scmp.lt.s32.totalorder %s1012_s10, %s724_s7  ;;  %p727_p11 = scmp.lt.s32.totalorder %s725_s8, %s719_s26 }
  0x62   : > { %564 = vmatpush3.bf16.msra.mxu0 %v563_v7  ;;  %v269_v28 = vadd.f32 %v502_v27, %v272_v26  ;;  %p722_p8 = pneg %p721_p6 }
  0x63   : > { %565 = vmatprep.subr.bf16.mxu0 %v811_v0  ;;  %p728_p0 = por %p727_p11, %p726_p12 }
  0x65   : > { %p729_p5 = pnand %p728_p0, %p722_p8 }
  0x66   : > { %567 = vmatpush3.bf16.msra.mxu0 %v566_v10 }
  0x67   : > { %568 = vmatprep.subr.bf16.mxu0 %v811_v0 }
  0x6a   : > { %570 = vmatpush3.bf16.msra.mxu0 %v569_v13 }
  0x6b   : > { %571 = vmatprep.subr.bf16.mxu0 %v811_v0 }
  0x6e   : > { %573 = vmatpush3.bf16.msra.mxu0 %v572_v16 }
  0x6f   : > { %574 = vmatprep.subr.bf16.mxu0 %v811_v0 }
  0x72   : > { %576 = vmatpush3.bf16.msra.mxu0 %v575_v19 }
  0x73   : > { %577 = vmatprep.subr.bf16.mxu0 %v811_v0 }
  0x76   : > { %579 = vmatpush3.bf16.msra.mxu0 %v578_v22 }
  0x77   : > { %580 = vmatprep.subr.bf16.mxu0 %v811_v0 }
  0x7a   : > { %582 = vmatpush3.bf16.msra.mxu0 %v581_v25 }
  0x7d   : > { %557 = vmatmul.mubr.f32.vlgmr.msra.gmra.mrb[0].mxu0 %v272_v26 }
 0x150   : > { %v355_v29 = vpop.f32.mrb[0].mxu0 }
 0x151   : > { %v359_v30 = vadd.f32 %v355_v29, %v269_v28  ;;  %v558_v31 = vpop.f32.mrb[1].mxu0 }
 0x153   : > { %365 = vst [vmem:[%s246_s9] sm:$0xff] %v359_v30 }
 0x154   : > { %732 = shalt.err (!%p729_p5)
}
 0x155   : > { %s733_s21 = scalar_lea.hbm %s1010_s29, 128  ;;  %s737_s27 = scalar_lea.hbm %s1062_s3, 256 }
 0x156   : > { %p734_p9 = scmp.ne.s32.totalorder %s1010_s29, %s733_s21  ;;  %p738_p7 = scmp.lt.u32.totalorder %s1010_s29, %s1062_s3 }
 0x157   : > { %p739_p3 = scmp.lt.u32.totalorder %s737_s27, %s733_s21  ;;  %p741_p4 = scmp.lt.u32.totalorder %s733_s21, %s1010_s29 }
 0x158   : > { %p735_p1 = pnand %p734_p9, %p931_p10 }
 0x159   : > { %p740_p13 = por %p739_p3, %p738_p7 }
 0x15a   : > { %p736_p2 = pneg %p735_p1 }
 0x15b   : > { %p742_p6 = por %p741_p4, %p740_p13 }
 0x15d   : > { %p743_p8 = pnand %p742_p6, %p736_p2 }
 0x15f   : > { %746 = shalt.err (!%p743_p8)
}
 0x160   : > { %589 = dma.vmem_to_hbm [thread:$0]  (%p931_p10), %s1012_s10, 128, %s1010_s29, %s367_s6  }
 0x161 PF: > { %s393_s22 = sand.u32 1, %s785_s12   ;;  %p1080_p12 = scmp.ne.s32.totalorder %s1070_s23, 0 }
 0x162   : > { %p1081_p11 = scmp.ge.s32.totalorder %s805_s17, 2  ;;  %s394_s24 = scalar_lea.sflag [#allocation5], %s393_s22 }
 0x164   : > { %p600_p0 = pnand %p1081_p11, %p1080_p12 }
 0x166   : > { %780 = dma.done.wait (!%p600_p0), %s394_s24, 128  }
 0x167   : > { %782 = vsyncadd (!%p600_p0), %s394_s24, 4294967168  ;;  %s20_s17 = sadd.s32 1, %s805_s17   ;;  %s1082_s12 = smov %s789_s13 }
 0x168   : > { %p17_p5 = scmp.ge.s32.totalorder %s20_s17, 4   ;;  %s1083_s13 = smov %s793_s14 }
 0x169   : > { %s1084_s14 = smov %s940_s5  ;;  %s1085_s15 = smov %s801_s16 }
 0x16a   : > { %s1086_s16 = smov %s1088_s28  ;;  %19 = sbr.rel (!%p17_p5) target bundleno = 7 (0x7), region = 97 }
 0x171   :  { %399 = vsyncpa [#allocation4], 1 }
 0x172   :  { %401 = vsyncpa [#allocation4 + $0x1], 1 }
 0x173   :  { %402 = vsyncpa [#allocation7], 1 }
 0x174   :  { %403 = vsyncpa [#allocation5], 1 }
 0x175   :  { %405 = vsyncpa [#allocation5 + $0x1], 1 }

</bundles_post_ra>
